<compile_context>
chip_gen: v5e
topology: v5e:2x2
jax: 0.10.0
libtpu: 0.0.40
codegen_flags: <defaults>
</compile_context>

<pallas_src>
import functools

import jax
import jax.numpy as jnp
from jax.experimental import pallas as pl
from jax.experimental.pallas import tpu as pltpu


def _round_up(v, m):
    return ((v + m - 1) // m) * m


def _sublane_multiple(dtype):
    # f32 -> 8 rows/vreg, bf16 -> 16, int8/fp8 -> 32.
    return {4: 8, 2: 16, 1: 32}[jnp.dtype(dtype).itemsize]


def _device_preset():
    """Per-generation tile / VMEM presets (trace-time host query)."""
    kind = ""
    try:
        kind = jax.devices()[0].device_kind.lower()
    except Exception:
        pass
    if "v7" in kind:   # 2 TCs, 64 MiB VMEM/TC, ~3.2 TB/s -> moderate tiles
        return dict(tm=768, tn=1024, tk=512, max_single_k=2048,
                    vmem_cap=56 << 20, cores=2)
    if "v6" in kind:   # 128 MiB VMEM, needs ~680 FLOP/byte -> big output tiles
        return dict(tm=1024, tn=2048, tk=512, max_single_k=2048,
                    vmem_cap=100 << 20, cores=1)
    if "v5" in kind:   # ~240 FLOP/byte is enough -> 512x512 stays compute-bound
        return dict(tm=512, tn=512, tk=512, max_single_k=4096,
                    vmem_cap=100 << 20, cores=1)
    return dict(tm=512, tn=512, tk=512, max_single_k=2048,
                vmem_cap=48 << 20, cores=1)


def _plan(F, O, preset):
    """Shared (prep + forward) plan: tile sizes and padded K / O dims."""
    tk = min(preset["tk"], _round_up(F, 128))
    tn = min(preset["tn"], _round_up(O, 128))
    Fp = _round_up(F, tk)
    Op = _round_up(O, tn)
    if Fp <= preset["max_single_k"]:
        tk = Fp                      # K fits one tile: collapse the K grid axis
    return tk, tn, Fp, Op


# ----------------------------- kernels --------------------------------------

def _kernel_single_k(x_ref, w_ref, b_ref, o_ref):
    # Whole K in one tile: no accumulator, no init/finalize branches.
    acc = jnp.dot(x_ref[...], w_ref[...], preferred_element_type=jnp.float32)
    o_ref[...] = (acc + b_ref[...].astype(jnp.float32)).astype(o_ref.dtype)


def _kernel_acc_in_out(x_ref, w_ref, b_ref, o_ref):
    # f32 output: accumulate directly into the resident output block.
    k = pl.program_id(2)

    @pl.when(k == 0)
    def _init():
        o_ref[...] = jnp.broadcast_to(b_ref[...].astype(jnp.float32),
                                      o_ref.shape)

    o_ref[...] += jnp.dot(x_ref[...], w_ref[...],
                          preferred_element_type=jnp.float32)


def _kernel_scratch(x_ref, w_ref, b_ref, o_ref, acc_ref):
    # Low-precision output: keep an f32 VMEM accumulator.
    k = pl.program_id(2)

    @pl.when(k == 0)
    def _init():
        acc_ref[...] = jnp.zeros_like(acc_ref)

    acc_ref[...] += jnp.dot(x_ref[...], w_ref[...],
                            preferred_element_type=jnp.float32)

    @pl.when(k == pl.num_programs(2) - 1)
    def _finalize():
        o_ref[...] = (acc_ref[...] + b_ref[...].astype(jnp.float32)).astype(
            o_ref.dtype)


# --------------------------- host wrappers -----------------------------------

def prepare_linear_params(w, b, *, compute_dtype=jnp.bfloat16):
    """One-time parameter prep (run OUTSIDE the per-call hot path).

    w: torch-layout weight (O, F);  b: bias (O,)
    Returns (w_p, b_p): weight transposed + padded to (Fp, Op) in compute
    dtype, bias padded to (1, Op) in f32, matching the forward's tiling plan.
    """
    O, F = w.shape
    tk, tn, Fp, Op = _plan(F, O, _device_preset())
    del tk, tn
    w_p = jnp.zeros((Fp, Op), compute_dtype).at[:F, :O].set(
        w.T.astype(compute_dtype))
    b_p = jnp.zeros((1, Op), jnp.float32).at[0, :O].set(
        b.astype(jnp.float32))
    return w_p, b_p


@functools.partial(jax.jit, static_argnames=("output_dim", "compute_dtype"))
def linear_forward(x, w_p, b_p, *, output_dim, compute_dtype=jnp.bfloat16):
    """y = x @ W.T + b  (nn.Linear forward) using pre-padded params.

    x:   (B, F)
    w_p: (Fp, Op) pre-transposed, pre-padded weight (from prepare_linear_params)
    b_p: (1, Op)  pre-padded f32 bias
    """
    B, F = x.shape
    out_dtype = x.dtype

    preset = _device_preset()
    tk, tn, Fp, Op = _plan(F, output_dim, preset)
    assert w_p.shape == (Fp, Op) and b_p.shape == (1, Op), (
        "params were prepared with a different plan; re-run "
        "prepare_linear_params on this device")

    # M tile: multiple of 16 for bf16 sublane packing (8 for f32, 32 for int8).
    sub = _sublane_multiple(compute_dtype)
    tm = min(preset["tm"], _round_up(B, sub))
    Bp = _round_up(B, tm)

    # v7x megacore: make sure at least one parallel axis has >= 2 tiles.
    if preset["cores"] >= 2 and Bp // tm == 1 and Op // tn == 1 and tn % 256 == 0:
        tn //= 2

    single_k = (tk == Fp)
    f32_out = jnp.dtype(out_dtype) == jnp.dtype(jnp.float32)

    # Pad / cast x only when needed (trace-time branch).
    if (Bp != B) or (Fp != F):
        x_c = jnp.zeros((Bp, Fp), compute_dtype).at[:B, :F].set(
            x.astype(compute_dtype))
    else:
        x_c = x.astype(compute_dtype)

    m_tiles, n_tiles, k_tiles = Bp // tm, Op // tn, Fp // tk

    cbytes = jnp.dtype(compute_dtype).itemsize
    obytes = jnp.dtype(out_dtype).itemsize

    # VMEM budget: double-buffered inputs/bias/output (+ scratch if used).
    use_scratch = (not single_k) and (not f32_out)
    vmem_need = (2 * tm * tk * cbytes + 2 * tk * tn * cbytes
                 + 2 * tn * 4 + 2 * tm * tn * obytes
                 + (tm * tn * 4 if use_scratch else 0))
    vmem_limit = int(min(max(int(1.5 * vmem_need), 8 << 20),
                         preset["vmem_cap"]))

    # bytes_accessed reflects re-streaming: x per N tile, W per M tile.
    cost = pl.CostEstimate(
        flops=2 * Bp * Fp * Op,
        transcendentals=0,
        bytes_accessed=(Bp * Fp * cbytes * n_tiles
                        + Fp * Op * cbytes * m_tiles
                        + Op * 4 * m_tiles
                        + Bp * Op * obytes),
    )

    if single_k:
        y_p = pl.pallas_call(
            _kernel_single_k,
            out_shape=jax.ShapeDtypeStruct((Bp, Op), out_dtype),
            grid=(m_tiles, n_tiles),
            in_specs=[
                pl.BlockSpec((tm, Fp), lambda i, j: (i, 0)),   # x
                pl.BlockSpec((Fp, tn), lambda i, j: (0, j)),   # W_t
                pl.BlockSpec((1, tn), lambda i, j: (0, j)),    # bias
            ],
            out_specs=pl.BlockSpec((tm, tn), lambda i, j: (i, j)),
            compiler_params=pltpu.CompilerParams(
                dimension_semantics=("parallel", "parallel"),
                vmem_limit_bytes=vmem_limit,
            ),
            cost_estimate=cost,
        )(x_c, w_p, b_p)
    else:
        kernel = _kernel_acc_in_out if f32_out else _kernel_scratch
        scratch = [] if f32_out else [pltpu.VMEM((tm, tn), jnp.float32)]
        y_p = pl.pallas_call(
            kernel,
            out_shape=jax.ShapeDtypeStruct((Bp, Op), out_dtype),
            grid=(m_tiles, n_tiles, k_tiles),
            in_specs=[
                pl.BlockSpec((tm, tk), lambda i, j, k: (i, k)),   # x
                pl.BlockSpec((tk, tn), lambda i, j, k: (k, j)),   # W_t
                pl.BlockSpec((1, tn), lambda i, j, k: (0, j)),    # bias
            ],
            out_specs=pl.BlockSpec((tm, tn), lambda i, j, k: (i, j)),
            scratch_shapes=scratch,
            compiler_params=pltpu.CompilerParams(
                dimension_semantics=("parallel", "parallel", "arbitrary"),
                vmem_limit_bytes=vmem_limit,
            ),
            cost_estimate=cost,
        )(x_c, w_p, b_p)

    # Slice only when padding was added (trace-time branch).
    if (Bp != B) or (Op != output_dim):
        return y_p[:B, :output_dim]
    return y_p


if __name__ == "__main__":
    # Small shapes consistent with Linear_Model(feature_num, output_num).
    batch, feature_num, output_num = 8, 32, 16

    key = jax.random.PRNGKey(0)
    kx, kw, kb = jax.random.split(key, 3)

    x = jax.random.normal(kx, (batch, feature_num), dtype=jnp.float32)
    # kaiming-uniform-like bound, as in torch nn.Linear init
    bound = 1.0 / (feature_num ** 0.5)
    w = jax.random.uniform(kw, (output_num, feature_num), dtype=jnp.float32,
                           minval=-bound, maxval=bound)   # torch layout (O, F)
    b = jax.random.uniform(kb, (output_num,), dtype=jnp.float32,
                           minval=-bound, maxval=bound)

    # One-time parameter prep (outside the per-call hot path).
    w_p, b_p = prepare_linear_params(w, b)

    y = linear_forward(x, w_p, b_p, output_dim=output_num)
    jax.block_until_ready(y)
    assert y.shape == (batch, output_num)

    # Reference with matching bf16 operands / f32 accumulation.
    y_ref = jnp.dot(x.astype(jnp.bfloat16), w.T.astype(jnp.bfloat16),
                    preferred_element_type=jnp.float32) + b
    assert jnp.allclose(y, y_ref, atol=1e-4, rtol=1e-4), "mismatch vs reference"

    # Sanity check against full-f32 math (bf16 rounding tolerance).
    y_f32 = x @ w.T + b
    assert jnp.allclose(y, y_f32, atol=3e-2, rtol=3e-2), "bf16 path diverged"

    print("KERNEL_OK")
</pallas_src>

<mosaic_0001>
module attributes {stable_mosaic.version = 11 : i64} {
  func.func @_kernel_single_k(%arg0: i32, %arg1: i32, %arg2: memref<16x128xbf16, #tpu.memory_space<vmem>>, %arg3: memref<128x128xbf16, #tpu.memory_space<vmem>>, %arg4: memref<1x128xf32, #tpu.memory_space<vmem>>, %arg5: memref<16x128xf32, #tpu.memory_space<vmem>>) attributes {dimension_semantics = [#tpu.dimension_semantics<parallel>, #tpu.dimension_semantics<parallel>], iteration_bounds = array<i64: 1, 1>, scalar_prefetch = 0 : i64, scratch_operands = 0 : i64, tpu.core_type = #tpu.core_type<tc>, window_params = [{transform_indices = @transform_0, window_bounds = array<i64: 16, 128>}, {transform_indices = @transform_1, window_bounds = array<i64: 128, 128>}, {transform_indices = @transform_2, window_bounds = array<i64: 1, 128>}, {transform_indices = @transform_3, window_bounds = array<i64: 16, 128>}]} {
    %c0 = arith.constant 0 : index
    %c0_0 = arith.constant 0 : index
    %0 = vector.load %arg2[%c0, %c0_0] : memref<16x128xbf16, #tpu.memory_space<vmem>>, vector<16x128xbf16>
    %c0_1 = arith.constant 0 : index
    %c0_2 = arith.constant 0 : index
    %1 = vector.load %arg3[%c0_1, %c0_2] : memref<128x128xbf16, #tpu.memory_space<vmem>>, vector<128x128xbf16>
    %cst = arith.constant dense<0.000000e+00> : vector<16x128xf32>
    %2 = tpu.matmul %0, %1, %cst {dimension_numbers = #tpu.dot_dimension_numbers<[1], [0], [0], [1], [0, 0, 1, 1], [], []>} : vector<16x128xbf16>, vector<128x128xbf16>, vector<16x128xf32> -> vector<16x128xf32>
    %c0_3 = arith.constant 0 : index
    %c0_4 = arith.constant 0 : index
    %3 = vector.load %arg4[%c0_3, %c0_4] : memref<1x128xf32, #tpu.memory_space<vmem>>, vector<1x128xf32>
    %4 = vector.broadcast %3 : vector<1x128xf32> to vector<16x128xf32>
    %5 = arith.addf %2, %4 : vector<16x128xf32>
    %c0_5 = arith.constant 0 : index
    %c0_6 = arith.constant 0 : index
    %6 = vector.load %arg5[%c0_5, %c0_6] : memref<16x128xf32, #tpu.memory_space<vmem>>, vector<16x128xf32>
    tpu.vector_store %arg5[%c0_5, %c0_6], %5 {strides = array<i32>} : memref<16x128xf32, #tpu.memory_space<vmem>>, vector<16x128xf32>,
    return
  }
  func.func @transform_0(%arg0: i32, %arg1: i32) -> (i32, i32) {
    %c0_i32 = arith.constant 0 : i32
    %c0_i32_0 = arith.constant 0 : i32
    return %arg0, %c0_i32 : i32, i32
  }
  func.func @transform_1(%arg0: i32, %arg1: i32) -> (i32, i32) {
    %c0_i32 = arith.constant 0 : i32
    %c0_i32_0 = arith.constant 0 : i32
    return %c0_i32, %arg1 : i32, i32
  }
  func.func @transform_2(%arg0: i32, %arg1: i32) -> (i32, i32) {
    %c0_i32 = arith.constant 0 : i32
    %c0_i32_0 = arith.constant 0 : i32
    return %c0_i32, %arg1 : i32, i32
  }
  func.func @transform_3(%arg0: i32, %arg1: i32) -> (i32, i32) {
    %c0_i32 = arith.constant 0 : i32
    return %arg0, %arg1 : i32, i32
  }
}

</mosaic_0001>

<bundles_post_ra>
// kernel: linear_forward.1
= control target key start
LH: loop header
LB: loop body
LE: loop exit
PB: predicated region body
PF: predicated region fallthrough
CT: control target
= control target key end

     0   :  { %8 = vsyncpa [#allocation3], 0  ;;  %s202_s15 = smov [#allocation2]   ;;  %s203_s17 = smov 64   ;;  %s240_s0 = inlined_call_operand.vmem [shape: bf16[16,128], index: 0, kind: input, shape index: {}]   ;;  %s241_s1 = inlined_call_operand.hbm [shape: bf16[128,128], index: 1, kind: input, shape index: {}]   ;;  %s242_s2 = inlined_call_operand.vmem [shape: f32[1,128], index: 2, kind: input, shape index: {}]   ;;  %s243_s3 = inlined_call_operand.vmem [shape: f32[16,128], index: 3, kind: output, shape index: {}]  }
   0x1   :  { %s15_s14 = sshll.u32 %s241_s1, 4  ;;  %s17_s16 = sshll.u32 %s202_s15, 4  ;;  %s16_s14 = int_to_ptr.hbm [resolvable:$true] %s15_s14  ;;  %s18_s16 = int_to_ptr.vmem [resolvable:$true] %s17_s16 }
   0x2   :  { %s204_s18 = smov 4  }
   0x3   :  { %23 = dma.hbm_to_vmem [thread:$0]  %s16_s14, 1024, %s18_s16, [#allocation3], %s203_s17, %s203_s17, %s204_s18  }
   0x4   :  { %200 = dma.done.wait [#allocation3], 1024  }
   0x5   :  { %201 = vsyncadd [#allocation3], 4294966272  ;;  %v171_v0 = vld [vmem:[#allocation2 + $0x38] sm:$0xff]  ;;  %v170_v1 = vld [vmem:[#allocation2 + $0x30] sm:$0xff] }
   0x6   :  { %106 = vmatpush.bf16.msra.mxu0 %v171_v0  ;;  %v169_v2 = vld [vmem:[#allocation2 + $0x28] sm:$0xff]  ;;  %v168_v3 = vld [vmem:[#allocation2 + $0x20] sm:$0xff]  ;;  %v167_v4 = vld [vmem:[#allocation2 + $0x18] sm:$0xff] }
   0x7   :  { %v166_v5 = vld [vmem:[#allocation2 + $0x10] sm:$0xff]  ;;  %v165_v6 = vld [vmem:[#allocation2 + $0x8] sm:$0xff]  ;;  %v164_v7 = vld [vmem:[#allocation2] sm:$0xff] }
   0x8   :  { %v163_v8 = vld [vmem:[%s240_s0] sm:$0xff] }
   0x9   :  { %v175_v9 = vld [vmem:[%s242_s2] ss:$0 sm:$0xff] }
   0xa   :  { %107 = vmatpush.bf16.msra.mxu0 %v170_v1 }
   0xe   :  { %108 = vmatpush.bf16.msra.mxu0 %v169_v2 }
  0x12   :  { %109 = vmatpush.bf16.msra.mxu0 %v168_v3 }
  0x16   :  { %110 = vmatpush.bf16.msra.mxu0 %v167_v4 }
  0x1a   :  { %111 = vmatpush.bf16.msra.mxu0 %v166_v5 }
  0x1e   :  { %112 = vmatpush.bf16.msra.mxu0 %v165_v6 }
  0x22   :  { %113 = vmatpush.bf16.msra.mxu0 %v164_v7 }
  0x25   :  { %114 = vmatmul.bf16.vlgmr.msra.gmra.mxu0 %v163_v8 }
  0xa2   :  { %v115_v10 = vpop.f32.mrf.mxu0 }
  0xa3   :  { %v116_v11 = vadd.f32 %v175_v9, %v115_v10 }
  0xa5   :  { %120 = vst [vmem:[%s243_s3] sm:$0xff] %v116_v11 }
  0xaa   :  { %v117_v12 = vpop.f32.mrf.mxu0 }
  0xab   :  { %v118_v13 = vadd.f32 %v175_v9, %v117_v12 }
  0xad   :  { %121 = vst [vmem:[%s243_s3 + $0x8] sm:$0xff] %v118_v13 }
  0xae   :  { %126 = vsyncpa [#allocation3], 1 }

</bundles_post_ra>
